<compile_context>
chip_gen: v7x
topology: tpu7x:2x2x1
jax: 0.10.0
libtpu: 0.0.40
codegen_flags: <defaults>
</compile_context>

<pallas_src>
import jax
import jax.numpy as jnp
from jax.experimental import pallas as pl
from jax.experimental.pallas import tpu as pltpu


def _copy_rows_kernel(rows_ref, out_ref):
    # Default-ids fast path: rows_ref is the (S, D) leading slice of the
    # embedding table; just copy it out.  Pure DMA, no compute.
    out_ref[...] = rows_ref[...]


def _gather_row_kernel(ids_ref, row_ref, out_ref):
    # ids_ref (SMEM, scalar-prefetch) only drives the in_spec index_map.
    # row_ref / out_ref are (1, D) VMEM tiles -> straight copy.
    del ids_ref
    out_ref[...] = row_ref[...]


def _default_slice(pe_weight, seq_length):
    # Single contiguous DMA of the first S rows of the table.
    _, D = pe_weight.shape
    return pl.pallas_call(
        _copy_rows_kernel,
        out_shape=jax.ShapeDtypeStruct((seq_length, D), pe_weight.dtype),
        grid=(1,),
        in_specs=[pl.BlockSpec((seq_length, D), lambda i: (0, 0))],
        out_specs=pl.BlockSpec((seq_length, D), lambda i: (0, 0)),
        compiler_params=pltpu.CompilerParams(
            dimension_semantics=("arbitrary",)),
    )(pe_weight)


def _gather_rows(pe_weight, flat_ids):
    # Data-dependent row gather: one (1, D) table row per grid step, selected
    # by the prefetched ids (no full-table load, no one-hot, no MXU).
    _, D = pe_weight.shape
    n = flat_ids.shape[0]
    return pl.pallas_call(
        _gather_row_kernel,
        out_shape=jax.ShapeDtypeStruct((n, D), pe_weight.dtype),
        grid_spec=pltpu.PrefetchScalarGridSpec(
            num_scalar_prefetch=1,
            grid=(n,),
            in_specs=[
                pl.BlockSpec((1, D), lambda i, ids: (ids[i], 0)),
            ],
            out_specs=pl.BlockSpec((1, D), lambda i, ids: (i, 0)),
        ),
        compiler_params=pltpu.CompilerParams(
            dimension_semantics=("arbitrary",)),
    )(flat_ids, pe_weight)


def learned_positional_encoding(x, pe_weight, seq_length, position_ids=None):
    """Pallas equivalent of LearnedPositionalEncoding.forward.

    `x` is accepted for signature parity but never read (matches PyTorch).
    Returns (B, S, D) position embeddings (B=1 for the default ids).
    """
    del x  # unused, exactly as in the reference module
    V, D = pe_weight.shape

    if position_ids is None:
        S = seq_length
        if S % 8 == 0 or S == V:
            # Fast path: default ids are arange(S) -> first S table rows.
            return _default_slice(pe_weight, S)[None]
        # Odd S: fall through to the general gather with arange ids.
        position_ids = jnp.arange(S, dtype=jnp.int32)[None, :]

    position_ids = jnp.asarray(position_ids, dtype=jnp.int32)
    if position_ids.ndim == 1:
        position_ids = position_ids[None, :]
    B, S = position_ids.shape

    # TODO(synk): PyTorch nn.Embedding raises on out-of-range ids; a Pallas
    # kernel cannot raise, so ids are clamped to keep the row DMA in bounds.
    flat_ids = jnp.clip(position_ids.reshape(-1), 0, V - 1)

    out2d = _gather_rows(pe_weight, flat_ids)
    return out2d.reshape(B, S, D)


if __name__ == "__main__":
    # Module hyperparameters (small, consistent with the constructor signature)
    max_position_embeddings = 64   # vocab of the positional embedding
    embedding_dim = 32
    seq_length = 8

    key = jax.random.PRNGKey(0)
    k_w, k_x, k_ids = jax.random.split(key, 3)

    # Deterministic parameter init (nn.Embedding default ~ N(0, 1))
    pe_weight = jax.random.normal(
        k_w, (max_position_embeddings, embedding_dim), dtype=jnp.float32)

    # Example input x: (batch=2, seq=8, embed=32). It is ignored by forward().
    x = jax.random.normal(k_x, (2, seq_length, embedding_dim), dtype=jnp.float32)

    # --- default-ids path (matches the registered arange(seq_length) buffer) ---
    out = jax.block_until_ready(
        learned_positional_encoding(x, pe_weight, seq_length))
    ref = pe_weight[None, :seq_length, :]
    assert out.shape == (1, seq_length, embedding_dim)
    assert out.dtype == jnp.float32
    assert jnp.allclose(out, ref, atol=1e-6), "mismatch on default ids path"

    # --- explicit position_ids path (batched, arbitrary rows) ---
    ids = jax.random.randint(
        k_ids, (2, seq_length), 0, max_position_embeddings, dtype=jnp.int32)
    out2 = jax.block_until_ready(
        learned_positional_encoding(x, pe_weight, seq_length, position_ids=ids))
    ref2 = jnp.take(pe_weight, ids, axis=0)
    assert out2.shape == (2, seq_length, embedding_dim)
    assert jnp.allclose(out2, ref2, atol=1e-6), "mismatch on explicit ids path"

    print("KERNEL_OK")
</pallas_src>

<mosaic_0001>
module attributes {stable_mosaic.version = 11 : i64} {
  func.func @_copy_rows_kernel(%arg0: i32, %arg1: memref<8x32xf32, #tpu.memory_space<vmem>>, %arg2: memref<8x32xf32, #tpu.memory_space<vmem>>) attributes {dimension_semantics = [#tpu.dimension_semantics<arbitrary>], iteration_bounds = array<i64: 1>, scalar_prefetch = 0 : i64, scratch_operands = 0 : i64, tpu.core_type = #tpu.core_type<tc>, window_params = [{transform_indices = @transform_0, window_bounds = array<i64: 8, 32>}, {pipeline_mode = #tpu.pipeline_mode<synchronous>, transform_indices = @transform_1, window_bounds = array<i64: 8, 32>}]} {
    %c0 = arith.constant 0 : index
    %c0_0 = arith.constant 0 : index
    %0 = vector.load %arg1[%c0, %c0_0] : memref<8x32xf32, #tpu.memory_space<vmem>>, vector<8x32xf32>
    %c0_1 = arith.constant 0 : index
    %c0_2 = arith.constant 0 : index
    %1 = vector.load %arg2[%c0_1, %c0_2] : memref<8x32xf32, #tpu.memory_space<vmem>>, vector<8x32xf32>
    tpu.vector_store %arg2[%c0_1, %c0_2], %0 {strides = array<i32>} : memref<8x32xf32, #tpu.memory_space<vmem>>, vector<8x32xf32>,
    return
  }
  func.func @transform_0(%arg0: i32) -> (i32, i32) {
    %c0_i32 = arith.constant 0 : i32
    %c0_i32_0 = arith.constant 0 : i32
    %c0_i32_1 = arith.constant 0 : i32
    return %c0_i32, %c0_i32_0 : i32, i32
  }
  func.func @transform_1(%arg0: i32) -> (i32, i32) {
    %c0_i32 = arith.constant 0 : i32
    %c0_i32_0 = arith.constant 0 : i32
    %c0_i32_1 = arith.constant 0 : i32
    return %c0_i32, %c0_i32_0 : i32, i32
  }
}

</mosaic_0001>

<bundles_post_ra>
// kernel: tpu_custom_call.1
= control target key start
LH: loop header
LB: loop body
LE: loop exit
PB: predicated region body
PF: predicated region fallthrough
CT: control target
= control target key end

     0   :  { %vm10_vm0 = vcmask 261120   ;;  %s77_s0 = inlined_call_operand.vmem [shape: f32[64,32], index: 0, kind: input, shape index: {}]   ;;  %s78_s1 = inlined_call_operand.hbm [shape: f32[8,32], index: 1, kind: output, shape index: {}]  }
   0x1   :  { %v9_v0 = vld [vmem:[%s77_s0] sm:$0xff] }
   0x2   :  { %6 = vsyncpa [#allocation3], 0  ;;  %11 = vst.msk [vmem:[#allocation2] sm:$0xff] %vm10_vm0, %v9_v0  ;;  %s51_s8 = smov [#allocation2]  }
   0x3   :  { %s18_s9 = sshll.u32 %s51_s8, 4  ;;  %s19_s9 = int_to_ptr.vmem [resolvable:$true] %s18_s9 }
   0x4   :  { %s27_s10 = scalar_lea.vmem %s19_s9, 128  ;;  %p32_p1 = scmp.lt.s32.totalorder %s19_s9, %s19_s9 }
   0x5   :  { %p28_p0 = scmp.ne.s32.totalorder %s19_s9, %s27_s10  ;;  %p33_p2 = scmp.lt.s32.totalorder %s27_s10, %s27_s10 }
   0x7   :  { %p34_p3 = por %p33_p2, %p32_p1 }
   0x9   :  { %p35_p4 = pnand %p34_p3, %p28_p0 }
   0xb   :  { %38 = shalt.err (!%p35_p4)
}
   0xc   :  { %s39_s13 = scalar_lea.hbm %s78_s1, 128 }
   0xd   :  { %p40_p5 = scmp.ne.s32.totalorder %s78_s1, %s39_s13  ;;  %p43_p6 = scmp.lt.u32.totalorder %s39_s13, %s78_s1 }
   0xf   :  { %p45_p7 = pnand %p43_p6, %p40_p5 }
  0x11   :  { %48 = shalt.err (!%p45_p7)
}
  0x12   :  { %21 = dma.vmem_to_hbm [thread:$0]  %s19_s9, 128, %s78_s1, [#allocation3]  }
  0x13   :  { %49 = dma.done.wait [#allocation3], 128  }
  0x14   :  { %50 = vsyncadd [#allocation3], 4294967168 }
  0x15   :  { %25 = vsyncpa [#allocation3], 1 }

</bundles_post_ra>
